<compile_context>
chip_gen: v7x
topology: tpu7x:2x2x1
jax: 0.10.0
libtpu: 0.0.40
codegen_flags: <defaults>
</compile_context>

<pallas_src>
import functools

import jax
import jax.numpy as jnp
from jax import lax
from jax.experimental import pallas as pl
from jax.experimental.pallas import tpu as pltpu


def _mha_kernel(q_ref, k_ref, v_ref, wq_ref, wk_ref, wv_ref, w0_ref, o_ref,
                *, num_heads, head_dim, seq_len, batch_block):
    H, D, S, BB = num_heads, head_dim, seq_len, batch_block
    mm_dtype = wq_ref.dtype          # matmul operand dtype (bf16 or f32)

    xq = q_ref[...].astype(mm_dtype)     # (BB*S, D)
    xk = k_ref[...].astype(mm_dtype)
    xv = v_ref[...].astype(mm_dtype)

    # Fused, lane-dense projections for the whole batch block:
    #   (BB*S, D) @ (D, H*D) -> (BB*S, H*D); the 1/d scale is folded into wq.
    qh_all = jnp.dot(xq, wq_ref[...], preferred_element_type=mm_dtype)
    kh_all = jnp.dot(xk, wk_ref[...], preferred_element_type=mm_dtype)
    vh_all = jnp.dot(xv, wv_ref[...], preferred_element_type=mm_dtype)

    for bi in range(BB):             # static unroll over batches in the block
        r0 = bi * S                  # sublane-aligned row offset (S % 8 == 0)
        out_b = jnp.zeros((S, D), jnp.float32)
        for h in range(H):           # static unroll over heads (H is small)
            c0 = h * D               # static lane offset inside the 128-lane tile
            qh = qh_all[r0:r0 + S, c0:c0 + D]      # (S, d)
            kh = kh_all[r0:r0 + S, c0:c0 + D]
            vh = vh_all[r0:r0 + S, c0:c0 + D]

            # Contract kh's feature axis directly (no explicit XLU transpose).
            scores = lax.dot_general(qh, kh, (((1,), (1,)), ((), ())),
                                     preferred_element_type=jnp.float32)  # (S, S) f32
            scores = scores - jnp.max(scores, axis=-1, keepdims=True)
            e = jnp.exp(scores)
            denom = jnp.sum(e, axis=-1, keepdims=True)
            attn = (e * pl.reciprocal(denom, approx=True)).astype(mm_dtype)

            ctx_h = jnp.dot(attn, vh,
                            preferred_element_type=jnp.float32).astype(mm_dtype)  # (S, d)
            # Accumulate through the matching sublane-aligned W0 row slice:
            #   concat_h(ctx_h) @ W0^T == sum_h ctx_h @ W0^T[h*d:(h+1)*d, :]
            out_b = out_b + jnp.dot(ctx_h, w0_ref[c0:c0 + D, :],
                                    preferred_element_type=jnp.float32)
        o_ref[r0:r0 + S, :] = out_b.astype(o_ref.dtype)


def multi_head_attention(query, key, value, wq, wk, wv, w0_weight,
                         *, matmul_dtype=jnp.bfloat16, batch_block=None):
    """query/key/value: (B, S, D).

    wq/wk/wv: (H, D, D) per-head projection weights, already transposed so a
              head computes x @ wq[h] (== torch's x @ W.T for nn.Linear).
    w0_weight: (D, H*D) == torch nn.Linear(H*D, D, bias=False).weight.
    matmul_dtype: operand dtype for all MXU matmuls (softmax / accumulation
                  always f32). bf16 is the native MXU rate on v5e/v6e/v7x.
    """
    B, S, D = query.shape
    H = wq.shape[0]
    scale = 1.0 / D    # ScaledDotProductAttention(scale=1/d)

    # Fuse per-head weights into lane-dense slabs (DMA'd once, VMEM-resident);
    # fold the 1/d scale into the query projection; cast for the MXU.
    wq_f = (jnp.transpose(wq, (1, 0, 2)).reshape(D, H * D) * scale).astype(matmul_dtype)
    wk_f = jnp.transpose(wk, (1, 0, 2)).reshape(D, H * D).astype(matmul_dtype)
    wv_f = jnp.transpose(wv, (1, 0, 2)).reshape(D, H * D).astype(matmul_dtype)
    w0_f = jnp.transpose(w0_weight).astype(matmul_dtype)       # (H*D, D)

    # Whole (small) batches per grid step; for large B cap rows/step (~1024)
    # so projection / score intermediates stay comfortably inside VMEM.
    if batch_block is None:
        batch_block = min(B, max(1, 1024 // S))
        while B % batch_block:
            batch_block -= 1
    rows = batch_block * S

    # Flatten batch into rows wrapper-side (free metadata reshape); the
    # attention itself stays strictly per-batch inside the kernel.
    q2 = query.reshape(B * S, D)
    k2 = key.reshape(B * S, D)
    v2 = value.reshape(B * S, D)

    kernel = functools.partial(_mha_kernel, num_heads=H, head_dim=D,
                               seq_len=S, batch_block=batch_block)

    x_spec = pl.BlockSpec((rows, D), lambda b: (b, 0))
    wqkv_spec = pl.BlockSpec((D, H * D), lambda b: (0, 0))     # constant -> resident
    w0_spec = pl.BlockSpec((H * D, D), lambda b: (0, 0))

    out2 = pl.pallas_call(
        kernel,
        out_shape=jax.ShapeDtypeStruct((B * S, D), query.dtype),
        grid_spec=pltpu.PrefetchScalarGridSpec(
            num_scalar_prefetch=0,
            grid=(B // batch_block,),
            in_specs=[x_spec, x_spec, x_spec,
                      wqkv_spec, wqkv_spec, wqkv_spec, w0_spec],
            out_specs=x_spec,
        ),
        compiler_params=pltpu.CompilerParams(
            # Multi-step grids split batch blocks across v7x's 2 TensorCores;
            # a single step (test sizes) stays on one core.
            dimension_semantics=("parallel",)),
    )(q2, k2, v2, wq_f, wk_f, wv_f, w0_f)
    return out2.reshape(B, S, D)


def _reference(query, key, value, wq, wk, wv, w0_weight):
    # Pure-JAX reference mirroring the torch forward (mask=None).
    D = query.shape[-1]
    heads = []
    for h in range(wq.shape[0]):
        qh = query @ wq[h]
        kh = key @ wk[h]
        vh = value @ wv[h]
        scores = (qh @ jnp.swapaxes(kh, -1, -2)) * (1.0 / D)
        attn = jax.nn.softmax(scores, axis=-1)
        heads.append(attn @ vh)
    concat = jnp.concatenate(heads, axis=-1)     # (B, S, H*D)
    return concat @ jnp.transpose(w0_weight)     # (B, S, D)


if __name__ == "__main__":
    B, S, D, H = 2, 8, 32, 4

    key0 = jax.random.PRNGKey(0)
    k_q, k_k, k_v, k_wq, k_wk, k_wv, k_w0 = jax.random.split(key0, 7)

    query = jax.random.normal(k_q, (B, S, D), dtype=jnp.float32)
    key_t = jax.random.normal(k_k, (B, S, D), dtype=jnp.float32)
    value = jax.random.normal(k_v, (B, S, D), dtype=jnp.float32)

    # Per-head projection weights (already transposed: kernel does x @ W).
    wq = jax.random.normal(k_wq, (H, D, D), dtype=jnp.float32) * (D ** -0.5)
    wk = jax.random.normal(k_wk, (H, D, D), dtype=jnp.float32) * (D ** -0.5)
    wv = jax.random.normal(k_wv, (H, D, D), dtype=jnp.float32) * (D ** -0.5)

    # w0: nn.Linear(H*D, D, bias=False).weight has shape (D, H*D); out = x @ w0.T
    w0_weight = jax.random.normal(k_w0, (D, H * D), dtype=jnp.float32) * ((H * D) ** -0.5)

    ref = _reference(query, key_t, value, wq, wk, wv, w0_weight)

    # Exact-parity path: f32 matmul operands (tolerance covers the EUP
    # approximate softmax reciprocal only).
    out_f32 = multi_head_attention(query, key_t, value, wq, wk, wv, w0_weight,
                                   matmul_dtype=jnp.float32)
    out_f32 = jax.block_until_ready(out_f32)
    assert out_f32.shape == (B, S, D)
    assert jnp.allclose(out_f32, ref, atol=5e-3, rtol=5e-3), "f32 path mismatch"

    # Default fast path: bf16 matmul operands (native MXU rate on all
    # generations), f32 softmax & accumulation.
    out_bf16 = multi_head_attention(query, key_t, value, wq, wk, wv, w0_weight)
    out_bf16 = jax.block_until_ready(out_bf16)
    assert out_bf16.shape == (B, S, D)
    assert jnp.allclose(out_bf16, ref, atol=3e-2, rtol=3e-2), "bf16 path mismatch"

    print("KERNEL_OK")
</pallas_src>

<mosaic_0001>
module attributes {stable_mosaic.version = 11 : i64} {
  func.func @_mha_kernel(%arg0: i32, %arg1: memref<16x32xf32, #tpu.memory_space<vmem>>, %arg2: memref<16x32xf32, #tpu.memory_space<vmem>>, %arg3: memref<16x32xf32, #tpu.memory_space<vmem>>, %arg4: memref<32x128xf32, #tpu.memory_space<vmem>>, %arg5: memref<32x128xf32, #tpu.memory_space<vmem>>, %arg6: memref<32x128xf32, #tpu.memory_space<vmem>>, %arg7: memref<128x32xf32, #tpu.memory_space<vmem>>, %arg8: memref<16x32xf32, #tpu.memory_space<vmem>>) attributes {dimension_semantics = [#tpu.dimension_semantics<parallel>], iteration_bounds = array<i64: 1>, scalar_prefetch = 0 : i64, scratch_operands = 0 : i64, tpu.core_type = #tpu.core_type<tc>, window_params = [{transform_indices = @transform_0, window_bounds = array<i64: 16, 32>}, {transform_indices = @transform_1, window_bounds = array<i64: 16, 32>}, {transform_indices = @transform_2, window_bounds = array<i64: 16, 32>}, {pipeline_mode = #tpu.pipeline_mode<synchronous>, transform_indices = @transform_3, window_bounds = array<i64: 32, 128>}, {pipeline_mode = #tpu.pipeline_mode<synchronous>, transform_indices = @transform_4, window_bounds = array<i64: 32, 128>}, {pipeline_mode = #tpu.pipeline_mode<synchronous>, transform_indices = @transform_5, window_bounds = array<i64: 32, 128>}, {pipeline_mode = #tpu.pipeline_mode<synchronous>, transform_indices = @transform_6, window_bounds = array<i64: 128, 32>}, {transform_indices = @transform_7, window_bounds = array<i64: 16, 32>}]} {
    %c0 = arith.constant 0 : index
    %c0_0 = arith.constant 0 : index
    %0 = vector.load %arg1[%c0, %c0_0] : memref<16x32xf32, #tpu.memory_space<vmem>>, vector<16x32xf32>
    %c0_1 = arith.constant 0 : index
    %c0_2 = arith.constant 0 : index
    %1 = vector.load %arg2[%c0_1, %c0_2] : memref<16x32xf32, #tpu.memory_space<vmem>>, vector<16x32xf32>
    %c0_3 = arith.constant 0 : index
    %c0_4 = arith.constant 0 : index
    %2 = vector.load %arg3[%c0_3, %c0_4] : memref<16x32xf32, #tpu.memory_space<vmem>>, vector<16x32xf32>
    %c0_5 = arith.constant 0 : index
    %c0_6 = arith.constant 0 : index
    %3 = vector.load %arg4[%c0_5, %c0_6] : memref<32x128xf32, #tpu.memory_space<vmem>>, vector<32x128xf32>
    %cst = arith.constant dense<0.000000e+00> : vector<16x128xf32>
    %4 = tpu.matmul %0, %3, %cst {dimension_numbers = #tpu.dot_dimension_numbers<[1], [0], [0], [1], [0, 0, 1, 1], [], []>} : vector<16x32xf32>, vector<32x128xf32>, vector<16x128xf32> -> vector<16x128xf32>
    %c0_7 = arith.constant 0 : index
    %c0_8 = arith.constant 0 : index
    %5 = vector.load %arg5[%c0_7, %c0_8] : memref<32x128xf32, #tpu.memory_space<vmem>>, vector<32x128xf32>
    %cst_9 = arith.constant dense<0.000000e+00> : vector<16x128xf32>
    %6 = tpu.matmul %1, %5, %cst_9 {dimension_numbers = #tpu.dot_dimension_numbers<[1], [0], [0], [1], [0, 0, 1, 1], [], []>} : vector<16x32xf32>, vector<32x128xf32>, vector<16x128xf32> -> vector<16x128xf32>
    %c0_10 = arith.constant 0 : index
    %c0_11 = arith.constant 0 : index
    %7 = vector.load %arg6[%c0_10, %c0_11] : memref<32x128xf32, #tpu.memory_space<vmem>>, vector<32x128xf32>
    %cst_12 = arith.constant dense<0.000000e+00> : vector<16x128xf32>
    %8 = tpu.matmul %2, %7, %cst_12 {dimension_numbers = #tpu.dot_dimension_numbers<[1], [0], [0], [1], [0, 0, 1, 1], [], []>} : vector<16x32xf32>, vector<32x128xf32>, vector<16x128xf32> -> vector<16x128xf32>
    %cst_13 = arith.constant 0.000000e+00 : f32
    %9 = vector.broadcast %cst_13 : f32 to vector<8x32xf32>
    %10 = vector.extract_strided_slice %4 {offsets = [0, 0], sizes = [8, 32], strides = [1, 1]} : vector<16x128xf32> to vector<8x32xf32>
    %11 = vector.extract_strided_slice %6 {offsets = [0, 0], sizes = [8, 32], strides = [1, 1]} : vector<16x128xf32> to vector<8x32xf32>
    %12 = vector.extract_strided_slice %8 {offsets = [0, 0], sizes = [8, 32], strides = [1, 1]} : vector<16x128xf32> to vector<8x32xf32>
    %cst_14 = arith.constant dense<0.000000e+00> : vector<8x8xf32>
    %13 = tpu.matmul %10, %11, %cst_14 {dimension_numbers = #tpu.dot_dimension_numbers<[1], [1], [0], [0], [0, 0, 1, 0], [], []>} : vector<8x32xf32>, vector<8x32xf32>, vector<8x8xf32> -> vector<8x8xf32>
    %cst_15 = arith.constant dense<0xFF800000> : vector<8xf32>
    %14 = vector.multi_reduction <maximumf>, %13, %cst_15 [1] : vector<8x8xf32> to vector<8xf32>
    %15 = vector.shape_cast %14 : vector<8xf32> to vector<8x1xf32>
    %16 = vector.broadcast %15 : vector<8x1xf32> to vector<8x8xf32>
    %17 = arith.subf %13, %16 : vector<8x8xf32>
    %18 = math.exp %17 : vector<8x8xf32>
    %cst_16 = arith.constant dense<0.000000e+00> : vector<8xf32>
    %19 = vector.multi_reduction <add>, %18, %cst_16 [1] : vector<8x8xf32> to vector<8xf32>
    %20 = vector.shape_cast %19 : vector<8xf32> to vector<8x1xf32>
    %21 = tpu.reciprocal %20 {approx = true} : vector<8x1xf32> -> vector<8x1xf32>
    %22 = vector.broadcast %21 : vector<8x1xf32> to vector<8x8xf32>
    %23 = arith.mulf %18, %22 : vector<8x8xf32>
    %cst_17 = arith.constant dense<0.000000e+00> : vector<8x32xf32>
    %24 = tpu.matmul %23, %12, %cst_17 {dimension_numbers = #tpu.dot_dimension_numbers<[1], [0], [0], [1], [0, 0, 1, 1], [], []>} : vector<8x8xf32>, vector<8x32xf32>, vector<8x32xf32> -> vector<8x32xf32>
    %c0_18 = arith.constant 0 : index
    %c0_19 = arith.constant 0 : index
    %25 = vector.load %arg7[%c0_18, %c0_19] : memref<128x32xf32, #tpu.memory_space<vmem>>, vector<32x32xf32>
    %cst_20 = arith.constant dense<0.000000e+00> : vector<8x32xf32>
    %26 = tpu.matmul %24, %25, %cst_20 {dimension_numbers = #tpu.dot_dimension_numbers<[1], [0], [0], [1], [0, 0, 1, 1], [], []>} : vector<8x32xf32>, vector<32x32xf32>, vector<8x32xf32> -> vector<8x32xf32>
    %27 = arith.addf %9, %26 : vector<8x32xf32>
    %28 = vector.extract_strided_slice %4 {offsets = [0, 32], sizes = [8, 32], strides = [1, 1]} : vector<16x128xf32> to vector<8x32xf32>
    %29 = vector.extract_strided_slice %6 {offsets = [0, 32], sizes = [8, 32], strides = [1, 1]} : vector<16x128xf32> to vector<8x32xf32>
    %30 = vector.extract_strided_slice %8 {offsets = [0, 32], sizes = [8, 32], strides = [1, 1]} : vector<16x128xf32> to vector<8x32xf32>
    %cst_21 = arith.constant dense<0.000000e+00> : vector<8x8xf32>
    %31 = tpu.matmul %28, %29, %cst_21 {dimension_numbers = #tpu.dot_dimension_numbers<[1], [1], [0], [0], [0, 0, 1, 0], [], []>} : vector<8x32xf32>, vector<8x32xf32>, vector<8x8xf32> -> vector<8x8xf32>
    %cst_22 = arith.constant dense<0xFF800000> : vector<8xf32>
    %32 = vector.multi_reduction <maximumf>, %31, %cst_22 [1] : vector<8x8xf32> to vector<8xf32>
    %33 = vector.shape_cast %32 : vector<8xf32> to vector<8x1xf32>
    %34 = vector.broadcast %33 : vector<8x1xf32> to vector<8x8xf32>
    %35 = arith.subf %31, %34 : vector<8x8xf32>
    %36 = math.exp %35 : vector<8x8xf32>
    %cst_23 = arith.constant dense<0.000000e+00> : vector<8xf32>
    %37 = vector.multi_reduction <add>, %36, %cst_23 [1] : vector<8x8xf32> to vector<8xf32>
    %38 = vector.shape_cast %37 : vector<8xf32> to vector<8x1xf32>
    %39 = tpu.reciprocal %38 {approx = true} : vector<8x1xf32> -> vector<8x1xf32>
    %40 = vector.broadcast %39 : vector<8x1xf32> to vector<8x8xf32>
    %41 = arith.mulf %36, %40 : vector<8x8xf32>
    %cst_24 = arith.constant dense<0.000000e+00> : vector<8x32xf32>
    %42 = tpu.matmul %41, %30, %cst_24 {dimension_numbers = #tpu.dot_dimension_numbers<[1], [0], [0], [1], [0, 0, 1, 1], [], []>} : vector<8x8xf32>, vector<8x32xf32>, vector<8x32xf32> -> vector<8x32xf32>
    %c32 = arith.constant 32 : index
    %c0_25 = arith.constant 0 : index
    %43 = vector.load %arg7[%c32, %c0_25] : memref<128x32xf32, #tpu.memory_space<vmem>>, vector<32x32xf32>
    %cst_26 = arith.constant dense<0.000000e+00> : vector<8x32xf32>
    %44 = tpu.matmul %42, %43, %cst_26 {dimension_numbers = #tpu.dot_dimension_numbers<[1], [0], [0], [1], [0, 0, 1, 1], [], []>} : vector<8x32xf32>, vector<32x32xf32>, vector<8x32xf32> -> vector<8x32xf32>
    %45 = arith.addf %27, %44 : vector<8x32xf32>
    %46 = vector.extract_strided_slice %4 {offsets = [0, 64], sizes = [8, 32], strides = [1, 1]} : vector<16x128xf32> to vector<8x32xf32>
    %47 = vector.extract_strided_slice %6 {offsets = [0, 64], sizes = [8, 32], strides = [1, 1]} : vector<16x128xf32> to vector<8x32xf32>
    %48 = vector.extract_strided_slice %8 {offsets = [0, 64], sizes = [8, 32], strides = [1, 1]} : vector<16x128xf32> to vector<8x32xf32>
    %cst_27 = arith.constant dense<0.000000e+00> : vector<8x8xf32>
    %49 = tpu.matmul %46, %47, %cst_27 {dimension_numbers = #tpu.dot_dimension_numbers<[1], [1], [0], [0], [0, 0, 1, 0], [], []>} : vector<8x32xf32>, vector<8x32xf32>, vector<8x8xf32> -> vector<8x8xf32>
    %cst_28 = arith.constant dense<0xFF800000> : vector<8xf32>
    %50 = vector.multi_reduction <maximumf>, %49, %cst_28 [1] : vector<8x8xf32> to vector<8xf32>
    %51 = vector.shape_cast %50 : vector<8xf32> to vector<8x1xf32>
    %52 = vector.broadcast %51 : vector<8x1xf32> to vector<8x8xf32>
    %53 = arith.subf %49, %52 : vector<8x8xf32>
    %54 = math.exp %53 : vector<8x8xf32>
    %cst_29 = arith.constant dense<0.000000e+00> : vector<8xf32>
    %55 = vector.multi_reduction <add>, %54, %cst_29 [1] : vector<8x8xf32> to vector<8xf32>
    %56 = vector.shape_cast %55 : vector<8xf32> to vector<8x1xf32>
    %57 = tpu.reciprocal %56 {approx = true} : vector<8x1xf32> -> vector<8x1xf32>
    %58 = vector.broadcast %57 : vector<8x1xf32> to vector<8x8xf32>
    %59 = arith.mulf %54, %58 : vector<8x8xf32>
    %cst_30 = arith.constant dense<0.000000e+00> : vector<8x32xf32>
    %60 = tpu.matmul %59, %48, %cst_30 {dimension_numbers = #tpu.dot_dimension_numbers<[1], [0], [0], [1], [0, 0, 1, 1], [], []>} : vector<8x8xf32>, vector<8x32xf32>, vector<8x32xf32> -> vector<8x32xf32>
    %c64 = arith.constant 64 : index
    %c0_31 = arith.constant 0 : index
    %61 = vector.load %arg7[%c64, %c0_31] : memref<128x32xf32, #tpu.memory_space<vmem>>, vector<32x32xf32>
    %cst_32 = arith.constant dense<0.000000e+00> : vector<8x32xf32>
    %62 = tpu.matmul %60, %61, %cst_32 {dimension_numbers = #tpu.dot_dimension_numbers<[1], [0], [0], [1], [0, 0, 1, 1], [], []>} : vector<8x32xf32>, vector<32x32xf32>, vector<8x32xf32> -> vector<8x32xf32>
    %63 = arith.addf %45, %62 : vector<8x32xf32>
    %64 = vector.extract_strided_slice %4 {offsets = [0, 96], sizes = [8, 32], strides = [1, 1]} : vector<16x128xf32> to vector<8x32xf32>
    %65 = vector.extract_strided_slice %6 {offsets = [0, 96], sizes = [8, 32], strides = [1, 1]} : vector<16x128xf32> to vector<8x32xf32>
    %66 = vector.extract_strided_slice %8 {offsets = [0, 96], sizes = [8, 32], strides = [1, 1]} : vector<16x128xf32> to vector<8x32xf32>
    %cst_33 = arith.constant dense<0.000000e+00> : vector<8x8xf32>
    %67 = tpu.matmul %64, %65, %cst_33 {dimension_numbers = #tpu.dot_dimension_numbers<[1], [1], [0], [0], [0, 0, 1, 0], [], []>} : vector<8x32xf32>, vector<8x32xf32>, vector<8x8xf32> -> vector<8x8xf32>
    %cst_34 = arith.constant dense<0xFF800000> : vector<8xf32>
    %68 = vector.multi_reduction <maximumf>, %67, %cst_34 [1] : vector<8x8xf32> to vector<8xf32>
    %69 = vector.shape_cast %68 : vector<8xf32> to vector<8x1xf32>
    %70 = vector.broadcast %69 : vector<8x1xf32> to vector<8x8xf32>
    %71 = arith.subf %67, %70 : vector<8x8xf32>
    %72 = math.exp %71 : vector<8x8xf32>
    %cst_35 = arith.constant dense<0.000000e+00> : vector<8xf32>
    %73 = vector.multi_reduction <add>, %72, %cst_35 [1] : vector<8x8xf32> to vector<8xf32>
    %74 = vector.shape_cast %73 : vector<8xf32> to vector<8x1xf32>
    %75 = tpu.reciprocal %74 {approx = true} : vector<8x1xf32> -> vector<8x1xf32>
    %76 = vector.broadcast %75 : vector<8x1xf32> to vector<8x8xf32>
    %77 = arith.mulf %72, %76 : vector<8x8xf32>
    %cst_36 = arith.constant dense<0.000000e+00> : vector<8x32xf32>
    %78 = tpu.matmul %77, %66, %cst_36 {dimension_numbers = #tpu.dot_dimension_numbers<[1], [0], [0], [1], [0, 0, 1, 1], [], []>} : vector<8x8xf32>, vector<8x32xf32>, vector<8x32xf32> -> vector<8x32xf32>
    %c96 = arith.constant 96 : index
    %c0_37 = arith.constant 0 : index
    %79 = vector.load %arg7[%c96, %c0_37] : memref<128x32xf32, #tpu.memory_space<vmem>>, vector<32x32xf32>
    %cst_38 = arith.constant dense<0.000000e+00> : vector<8x32xf32>
    %80 = tpu.matmul %78, %79, %cst_38 {dimension_numbers = #tpu.dot_dimension_numbers<[1], [0], [0], [1], [0, 0, 1, 1], [], []>} : vector<8x32xf32>, vector<32x32xf32>, vector<8x32xf32> -> vector<8x32xf32>
    %81 = arith.addf %63, %80 : vector<8x32xf32>
    %c0_39 = arith.constant 0 : index
    %c0_40 = arith.constant 0 : index
    %82 = vector.load %arg8[%c0_39, %c0_40] : memref<16x32xf32, #tpu.memory_space<vmem>>, vector<8x32xf32>
    tpu.vector_store %arg8[%c0_39, %c0_40], %81 {strides = array<i32>} : memref<16x32xf32, #tpu.memory_space<vmem>>, vector<8x32xf32>,
    %cst_41 = arith.constant 0.000000e+00 : f32
    %83 = vector.broadcast %cst_41 : f32 to vector<8x32xf32>
    %84 = vector.extract_strided_slice %4 {offsets = [8, 0], sizes = [8, 32], strides = [1, 1]} : vector<16x128xf32> to vector<8x32xf32>
    %85 = vector.extract_strided_slice %6 {offsets = [8, 0], sizes = [8, 32], strides = [1, 1]} : vector<16x128xf32> to vector<8x32xf32>
    %86 = vector.extract_strided_slice %8 {offsets = [8, 0], sizes = [8, 32], strides = [1, 1]} : vector<16x128xf32> to vector<8x32xf32>
    %cst_42 = arith.constant dense<0.000000e+00> : vector<8x8xf32>
    %87 = tpu.matmul %84, %85, %cst_42 {dimension_numbers = #tpu.dot_dimension_numbers<[1], [1], [0], [0], [0, 0, 1, 0], [], []>} : vector<8x32xf32>, vector<8x32xf32>, vector<8x8xf32> -> vector<8x8xf32>
    %cst_43 = arith.constant dense<0xFF800000> : vector<8xf32>
    %88 = vector.multi_reduction <maximumf>, %87, %cst_43 [1] : vector<8x8xf32> to vector<8xf32>
    %89 = vector.shape_cast %88 : vector<8xf32> to vector<8x1xf32>
    %90 = vector.broadcast %89 : vector<8x1xf32> to vector<8x8xf32>
    %91 = arith.subf %87, %90 : vector<8x8xf32>
    %92 = math.exp %91 : vector<8x8xf32>
    %cst_44 = arith.constant dense<0.000000e+00> : vector<8xf32>
    %93 = vector.multi_reduction <add>, %92, %cst_44 [1] : vector<8x8xf32> to vector<8xf32>
    %94 = vector.shape_cast %93 : vector<8xf32> to vector<8x1xf32>
    %95 = tpu.reciprocal %94 {approx = true} : vector<8x1xf32> -> vector<8x1xf32>
    %96 = vector.broadcast %95 : vector<8x1xf32> to vector<8x8xf32>
    %97 = arith.mulf %92, %96 : vector<8x8xf32>
    %cst_45 = arith.constant dense<0.000000e+00> : vector<8x32xf32>
    %98 = tpu.matmul %97, %86, %cst_45 {dimension_numbers = #tpu.dot_dimension_numbers<[1], [0], [0], [1], [0, 0, 1, 1], [], []>} : vector<8x8xf32>, vector<8x32xf32>, vector<8x32xf32> -> vector<8x32xf32>
    %c0_46 = arith.constant 0 : index
    %c0_47 = arith.constant 0 : index
    %99 = vector.load %arg7[%c0_46, %c0_47] : memref<128x32xf32, #tpu.memory_space<vmem>>, vector<32x32xf32>
    %cst_48 = arith.constant dense<0.000000e+00> : vector<8x32xf32>
    %100 = tpu.matmul %98, %99, %cst_48 {dimension_numbers = #tpu.dot_dimension_numbers<[1], [0], [0], [1], [0, 0, 1, 1], [], []>} : vector<8x32xf32>, vector<32x32xf32>, vector<8x32xf32> -> vector<8x32xf32>
    %101 = arith.addf %83, %100 : vector<8x32xf32>
    %102 = vector.extract_strided_slice %4 {offsets = [8, 32], sizes = [8, 32], strides = [1, 1]} : vector<16x128xf32> to vector<8x32xf32>
    %103 = vector.extract_strided_slice %6 {offsets = [8, 32], sizes = [8, 32], strides = [1, 1]} : vector<16x128xf32> to vector<8x32xf32>
    %104 = vector.extract_strided_slice %8 {offsets = [8, 32], sizes = [8, 32], strides = [1, 1]} : vector<16x128xf32> to vector<8x32xf32>
    %cst_49 = arith.constant dense<0.000000e+00> : vector<8x8xf32>
    %105 = tpu.matmul %102, %103, %cst_49 {dimension_numbers = #tpu.dot_dimension_numbers<[1], [1], [0], [0], [0, 0, 1, 0], [], []>} : vector<8x32xf32>, vector<8x32xf32>, vector<8x8xf32> -> vector<8x8xf32>
    %cst_50 = arith.constant dense<0xFF800000> : vector<8xf32>
    %106 = vector.multi_reduction <maximumf>, %105, %cst_50 [1] : vector<8x8xf32> to vector<8xf32>
    %107 = vector.shape_cast %106 : vector<8xf32> to vector<8x1xf32>
    %108 = vector.broadcast %107 : vector<8x1xf32> to vector<8x8xf32>
    %109 = arith.subf %105, %108 : vector<8x8xf32>
    %110 = math.exp %109 : vector<8x8xf32>
    %cst_51 = arith.constant dense<0.000000e+00> : vector<8xf32>
    %111 = vector.multi_reduction <add>, %110, %cst_51 [1] : vector<8x8xf32> to vector<8xf32>
    %112 = vector.shape_cast %111 : vector<8xf32> to vector<8x1xf32>
    %113 = tpu.reciprocal %112 {approx = true} : vector<8x1xf32> -> vector<8x1xf32>
    %114 = vector.broadcast %113 : vector<8x1xf32> to vector<8x8xf32>
    %115 = arith.mulf %110, %114 : vector<8x8xf32>
    %cst_52 = arith.constant dense<0.000000e+00> : vector<8x32xf32>
    %116 = tpu.matmul %115, %104, %cst_52 {dimension_numbers = #tpu.dot_dimension_numbers<[1], [0], [0], [1], [0, 0, 1, 1], [], []>} : vector<8x8xf32>, vector<8x32xf32>, vector<8x32xf32> -> vector<8x32xf32>
    %c32_53 = arith.constant 32 : index
    %c0_54 = arith.constant 0 : index
    %117 = vector.load %arg7[%c32_53, %c0_54] : memref<128x32xf32, #tpu.memory_space<vmem>>, vector<32x32xf32>
    %cst_55 = arith.constant dense<0.000000e+00> : vector<8x32xf32>
    %118 = tpu.matmul %116, %117, %cst_55 {dimension_numbers = #tpu.dot_dimension_numbers<[1], [0], [0], [1], [0, 0, 1, 1], [], []>} : vector<8x32xf32>, vector<32x32xf32>, vector<8x32xf32> -> vector<8x32xf32>
    %119 = arith.addf %101, %118 : vector<8x32xf32>
    %120 = vector.extract_strided_slice %4 {offsets = [8, 64], sizes = [8, 32], strides = [1, 1]} : vector<16x128xf32> to vector<8x32xf32>
    %121 = vector.extract_strided_slice %6 {offsets = [8, 64], sizes = [8, 32], strides = [1, 1]} : vector<16x128xf32> to vector<8x32xf32>
    %122 = vector.extract_strided_slice %8 {offsets = [8, 64], sizes = [8, 32], strides = [1, 1]} : vector<16x128xf32> to vector<8x32xf32>
    %cst_56 = arith.constant dense<0.000000e+00> : vector<8x8xf32>
    %123 = tpu.matmul %120, %121, %cst_56 {dimension_numbers = #tpu.dot_dimension_numbers<[1], [1], [0], [0], [0, 0, 1, 0], [], []>} : vector<8x32xf32>, vector<8x32xf32>, vector<8x8xf32> -> vector<8x8xf32>
    %cst_57 = arith.constant dense<0xFF800000> : vector<8xf32>
    %124 = vector.multi_reduction <maximumf>, %123, %cst_57 [1] : vector<8x8xf32> to vector<8xf32>
    %125 = vector.shape_cast %124 : vector<8xf32> to vector<8x1xf32>
    %126 = vector.broadcast %125 : vector<8x1xf32> to vector<8x8xf32>
    %127 = arith.subf %123, %126 : vector<8x8xf32>
    %128 = math.exp %127 : vector<8x8xf32>
    %cst_58 = arith.constant dense<0.000000e+00> : vector<8xf32>
    %129 = vector.multi_reduction <add>, %128, %cst_58 [1] : vector<8x8xf32> to vector<8xf32>
    %130 = vector.shape_cast %129 : vector<8xf32> to vector<8x1xf32>
    %131 = tpu.reciprocal %130 {approx = true} : vector<8x1xf32> -> vector<8x1xf32>
    %132 = vector.broadcast %131 : vector<8x1xf32> to vector<8x8xf32>
    %133 = arith.mulf %128, %132 : vector<8x8xf32>
    %cst_59 = arith.constant dense<0.000000e+00> : vector<8x32xf32>
    %134 = tpu.matmul %133, %122, %cst_59 {dimension_numbers = #tpu.dot_dimension_numbers<[1], [0], [0], [1], [0, 0, 1, 1], [], []>} : vector<8x8xf32>, vector<8x32xf32>, vector<8x32xf32> -> vector<8x32xf32>
    %c64_60 = arith.constant 64 : index
    %c0_61 = arith.constant 0 : index
    %135 = vector.load %arg7[%c64_60, %c0_61] : memref<128x32xf32, #tpu.memory_space<vmem>>, vector<32x32xf32>
    %cst_62 = arith.constant dense<0.000000e+00> : vector<8x32xf32>
    %136 = tpu.matmul %134, %135, %cst_62 {dimension_numbers = #tpu.dot_dimension_numbers<[1], [0], [0], [1], [0, 0, 1, 1], [], []>} : vector<8x32xf32>, vector<32x32xf32>, vector<8x32xf32> -> vector<8x32xf32>
    %137 = arith.addf %119, %136 : vector<8x32xf32>
    %138 = vector.extract_strided_slice %4 {offsets = [8, 96], sizes = [8, 32], strides = [1, 1]} : vector<16x128xf32> to vector<8x32xf32>
    %139 = vector.extract_strided_slice %6 {offsets = [8, 96], sizes = [8, 32], strides = [1, 1]} : vector<16x128xf32> to vector<8x32xf32>
    %140 = vector.extract_strided_slice %8 {offsets = [8, 96], sizes = [8, 32], strides = [1, 1]} : vector<16x128xf32> to vector<8x32xf32>
    %cst_63 = arith.constant dense<0.000000e+00> : vector<8x8xf32>
    %141 = tpu.matmul %138, %139, %cst_63 {dimension_numbers = #tpu.dot_dimension_numbers<[1], [1], [0], [0], [0, 0, 1, 0], [], []>} : vector<8x32xf32>, vector<8x32xf32>, vector<8x8xf32> -> vector<8x8xf32>
    %cst_64 = arith.constant dense<0xFF800000> : vector<8xf32>
    %142 = vector.multi_reduction <maximumf>, %141, %cst_64 [1] : vector<8x8xf32> to vector<8xf32>
    %143 = vector.shape_cast %142 : vector<8xf32> to vector<8x1xf32>
    %144 = vector.broadcast %143 : vector<8x1xf32> to vector<8x8xf32>
    %145 = arith.subf %141, %144 : vector<8x8xf32>
    %146 = math.exp %145 : vector<8x8xf32>
    %cst_65 = arith.constant dense<0.000000e+00> : vector<8xf32>
    %147 = vector.multi_reduction <add>, %146, %cst_65 [1] : vector<8x8xf32> to vector<8xf32>
    %148 = vector.shape_cast %147 : vector<8xf32> to vector<8x1xf32>
    %149 = tpu.reciprocal %148 {approx = true} : vector<8x1xf32> -> vector<8x1xf32>
    %150 = vector.broadcast %149 : vector<8x1xf32> to vector<8x8xf32>
    %151 = arith.mulf %146, %150 : vector<8x8xf32>
    %cst_66 = arith.constant dense<0.000000e+00> : vector<8x32xf32>
    %152 = tpu.matmul %151, %140, %cst_66 {dimension_numbers = #tpu.dot_dimension_numbers<[1], [0], [0], [1], [0, 0, 1, 1], [], []>} : vector<8x8xf32>, vector<8x32xf32>, vector<8x32xf32> -> vector<8x32xf32>
    %c96_67 = arith.constant 96 : index
    %c0_68 = arith.constant 0 : index
    %153 = vector.load %arg7[%c96_67, %c0_68] : memref<128x32xf32, #tpu.memory_space<vmem>>, vector<32x32xf32>
    %cst_69 = arith.constant dense<0.000000e+00> : vector<8x32xf32>
    %154 = tpu.matmul %152, %153, %cst_69 {dimension_numbers = #tpu.dot_dimension_numbers<[1], [0], [0], [1], [0, 0, 1, 1], [], []>} : vector<8x32xf32>, vector<32x32xf32>, vector<8x32xf32> -> vector<8x32xf32>
    %155 = arith.addf %137, %154 : vector<8x32xf32>
    %c8 = arith.constant 8 : index
    %c0_70 = arith.constant 0 : index
    %156 = vector.load %arg8[%c8, %c0_70] : memref<16x32xf32, #tpu.memory_space<vmem>>, vector<8x32xf32>
    tpu.vector_store %arg8[%c8, %c0_70], %155 {strides = array<i32>} : memref<16x32xf32, #tpu.memory_space<vmem>>, vector<8x32xf32>,
    return
  }
  func.func @transform_0(%arg0: i32) -> (i32, i32) {
    %c0_i32 = arith.constant 0 : i32
    %c0_i32_0 = arith.constant 0 : i32
    return %arg0, %c0_i32 : i32, i32
  }
  func.func @transform_1(%arg0: i32) -> (i32, i32) {
    %c0_i32 = arith.constant 0 : i32
    %c0_i32_0 = arith.constant 0 : i32
    return %arg0, %c0_i32 : i32, i32
  }
  func.func @transform_2(%arg0: i32) -> (i32, i32) {
    %c0_i32 = arith.constant 0 : i32
    %c0_i32_0 = arith.constant 0 : i32
    return %arg0, %c0_i32 : i32, i32
  }
  func.func @transform_3(%arg0: i32) -> (i32, i32) {
    %c0_i32 = arith.constant 0 : i32
    %c0_i32_0 = arith.constant 0 : i32
    %c0_i32_1 = arith.constant 0 : i32
    return %c0_i32, %c0_i32_0 : i32, i32
  }
  func.func @transform_4(%arg0: i32) -> (i32, i32) {
    %c0_i32 = arith.constant 0 : i32
    %c0_i32_0 = arith.constant 0 : i32
    %c0_i32_1 = arith.constant 0 : i32
    return %c0_i32, %c0_i32_0 : i32, i32
  }
  func.func @transform_5(%arg0: i32) -> (i32, i32) {
    %c0_i32 = arith.constant 0 : i32
    %c0_i32_0 = arith.constant 0 : i32
    %c0_i32_1 = arith.constant 0 : i32
    return %c0_i32, %c0_i32_0 : i32, i32
  }
  func.func @transform_6(%arg0: i32) -> (i32, i32) {
    %c0_i32 = arith.constant 0 : i32
    %c0_i32_0 = arith.constant 0 : i32
    %c0_i32_1 = arith.constant 0 : i32
    return %c0_i32, %c0_i32_0 : i32, i32
  }
  func.func @transform_7(%arg0: i32) -> (i32, i32) {
    %c0_i32 = arith.constant 0 : i32
    %c0_i32_0 = arith.constant 0 : i32
    return %arg0, %c0_i32 : i32, i32
  }
}

</mosaic_0001>

<bundles_post_ra>
// kernel: tpu_custom_call.1
= control target key start
LH: loop header
LB: loop body
LE: loop exit
PB: predicated region body
PF: predicated region fallthrough
CT: control target
= control target key end

     0   :  { %vm37_vm0 = vcmask 261120   ;;  %s3097_s0 = inlined_call_operand.vmem [shape: f32[16,32], index: 0, kind: input, shape index: {}]   ;;  %s3098_s1 = inlined_call_operand.vmem [shape: f32[16,32], index: 1, kind: input, shape index: {}]   ;;  %s3099_s2 = inlined_call_operand.vmem [shape: f32[16,32], index: 2, kind: input, shape index: {}]   ;;  %s3100_s3 = inlined_call_operand.vmem [shape: f32[32,128], index: 3, kind: input, shape index: {}]   ;;  %s3101_s4 = inlined_call_operand.vmem [shape: f32[32,128], index: 4, kind: input, shape index: {}]   ;;  %s3102_s5 = inlined_call_operand.vmem [shape: f32[32,128], index: 5, kind: input, shape index: {}]   ;;  %s3103_s6 = inlined_call_operand.vmem [shape: f32[128,32], index: 6, kind: input, shape index: {}]   ;;  %s3104_s7 = inlined_call_operand.hbm [shape: f32[16,32], index: 7, kind: output, shape index: {}]  }
   0x1   :  { %v33_v0 = vld [vmem:[%s3100_s3] sm:$0xff]  ;;  %v34_v1 = vld [vmem:[%s3100_s3 + $0x8] sm:$0xff]  ;;  %v35_v2 = vld [vmem:[%s3100_s3 + $0x10] sm:$0xff] }
   0x2   :  { %v2569_v3 = vpack.c.bf16 %v34_v1, %v33_v0  ;;  %v36_v4 = vld [vmem:[%s3100_s3 + $0x18] sm:$0xff]  ;;  %v27_v5 = vld [vmem:[%s3097_s0] sm:$0xff]  ;;  %v120_v8 = vld [vmem:[%s3101_s4 + $0x8] sm:$0xff] }
   0x3   :  { %v2573_v6 = vpack.c.bf16 %v36_v4, %v35_v2  ;;  %2376 = vmatprep.mubr.msk.f32.mxu1 %vm37_vm0, %v27_v5  ;;  %v119_v7 = vld [vmem:[%s3101_s4] sm:$0xff] }
   0x4   :  { %2570 = vmatprep.subr.bf16.mxu1 %v2569_v3 }
   0x5   :  { %2572 = vmatpush3.bf16.msra.mxu1 %v2569_v3 }
   0x6   :  { %12 = vsyncpa [#allocation3], 0  ;;  %2574 = vmatprep.subr.bf16.mxu1 %v2573_v6  ;;  %v2577_v9 = vpack.c.bf16 %v120_v8, %v119_v7  ;;  %v121_v10 = vld [vmem:[%s3101_s4 + $0x10] sm:$0xff]  ;;  %v122_v11 = vld [vmem:[%s3101_s4 + $0x18] sm:$0xff]  ;;  %v2718_v16 = vmov 0.0   ;;  %vm2719_vm1 = vmmov 0  }
   0x7   :  { %v28_v12 = vld [vmem:[%s3097_s0 + $0x8] sm:$0xff]  ;;  %v2581_v13 = vpack.c.bf16 %v122_v11, %v121_v10  ;;  %v29_v14 = vld [vmem:[%s3098_s1] sm:$0xff]  ;;  %v206_v19 = vld [vmem:[%s3102_s5 + $0x10] sm:$0xff]  ;;  %vm365_vm2 = vcmask 64512   ;;  %s2722_s10 = smov 32   ;;  %v2723_v56 = vmov 0.0|0.0  }
   0x8   :  { %v30_v15 = vld [vmem:[%s3098_s1 + $0x8] sm:$0xff]  ;;  %v204_v17 = vld [vmem:[%s3102_s5] sm:$0xff]  ;;  %v207_v21 = vld [vmem:[%s3102_s5 + $0x18] sm:$0xff] }
   0x9   :  { %2576 = vmatpush3.bf16.msra.mxu1 %v2573_v6  ;;  %v205_v18 = vld [vmem:[%s3102_s5 + $0x8] sm:$0xff]  ;;  %v31_v22 = vld [vmem:[%s3099_s2] sm:$0xff]  ;;  %v2589_v23 = vpack.c.bf16 %v207_v21, %v206_v19  ;;  %s2720_s5 = smov 96   ;;  %v622_v55 = vld [vmem:[%s3103_s6 + $0x30] sm:$0xff] }
   0xa   :  { %2578 = vmatprep.subr.bf16.mxu1 %v2577_v9  ;;  %v2585_v20 = vpack.c.bf16 %v205_v18, %v204_v17  ;;  %2398 = vmatprep.mubr.msk.f32.mxu0 %vm37_vm0, %v31_v22  ;;  %v32_v24 = vld [vmem:[%s3099_s2 + $0x8] sm:$0xff]  ;;  %s2721_s2 = smov 64   ;;  %v620_v53 = vld [vmem:[%s3103_s6 + $0x20] sm:$0xff]  ;;  %v623_v58 = vld [vmem:[%s3103_s6 + $0x38] sm:$0xff] }
   0xb   :  { %v621_v54 = vld [vmem:[%s3103_s6 + $0x28] sm:$0xff]  ;;  %v2890_v59 = vpack.c.bf16 %v623_v58, %v622_v55  ;;  %v450_v4 = vld [vmem:[%s3103_s6] sm:$0xff]  ;;  %v452_v7 = vld [vmem:[%s3103_s6 + $0x10] sm:$0xff] }
   0xc   :  { %2377 = vmatmul.mubr.msk.f32.vlgmr.msra.gmra.mrb[0].mxu1 %vm37_vm0, %v28_v12  ;;  %2586 = vmatprep.subr.bf16.mxu0 %v2585_v20  ;;  %v2884_v57 = vpack.c.bf16 %v621_v54, %v620_v53  ;;  %v451_v5 = vld [vmem:[%s3103_s6 + $0x8] sm:$0xff]  ;;  %v453_v8 = vld [vmem:[%s3103_s6 + $0x18] sm:$0xff]  ;;  %v935_v21 = vld [vmem:[%s3103_s6 + $0x40] sm:$0xff] }
   0xd   :  { %2580 = vmatpush3.bf16.msra.mxu1 %v2577_v9  ;;  %2387 = vmatprep.mubr.msk.f32.mxu1 %vm37_vm0, %v29_v14  ;;  %v2910_v6 = vpack.c.bf16 %v451_v5, %v450_v4  ;;  %v2920_v11 = vpack.c.bf16 %v453_v8, %v452_v7  ;;  %v936_v22 = vld [vmem:[%s3103_s6 + $0x48] sm:$0xff] }
   0xe   :  { %2582 = vmatprep.subr.bf16.mxu1 %v2581_v13  ;;  %2588 = vmatpush3.bf16.msra.mxu0 %v2585_v20 }
   0xf   :  { %2590 = vmatprep.subr.bf16.mxu0 %v2589_v23 }
  0x11   :  { %2584 = vmatpush3.bf16.msra.mxu1 %v2581_v13 }
  0x12   :  { %2401 = vmatprep.subr.mxu1 %v2718_v16  ;;  %2592 = vmatpush3.bf16.msra.mxu0 %v2589_v23  ;;  %v937_v23 = vld [vmem:[%s3103_s6 + $0x50] sm:$0xff] }
  0x13   :  { %2411 = vmatprep.subr.mxu0 %v2718_v16 }
  0x14   :  { %2388 = vmatmul.mubr.msk.f32.vlgmr.msra.gmra.mrb[2].mxu1 %vm37_vm0, %v30_v15 }
  0x15   :  { %2403 = vmatprep.mubr.msk.f32.mxu1 %vm2719_vm1, %v2718_v16  ;;  %2399 = vmatmul.mubr.msk.f32.vlgmr.msra.gmra.mrb[0].mxu0 %vm37_vm0, %v32_v24  ;;  %v2943_v24 = vpack.c.bf16 %v936_v22, %v935_v21 }
  0x16   :  { %2413 = vmatprep.mubr.msk.f32.mxu0 %vm2719_vm1, %v2718_v16 }
  0xdf   :  { %v2833_v25 = vpop.f32.mrb[0].mxu1 }
  0xe0   :  { %v2835_v26 = vpop.f32.mrb[1].mxu1 }
  0xe7   :  { %v2837_v27 = vpop.f32.mrb[2].mxu1 }
  0xe8   :  { %v195_v28 = vpop.f32.mrb[3].mxu1  ;;  %v2848_v29 = vpop.f32.mrb[0].mxu0 }
  0xe9   :  { %456 = vrot.lane.b32.xlu0 %v195_v28, %s2720_s5  ;;  %2402 = vmatpush3.xpose.msk.msra.mxu1 %vm37_vm0, %v195_v28  ;;  %v2850_v30 = vpop.f32.mrb[1].mxu0 }
  0xea   :  { %2406 = vmatprep.subr.mxu1 %v2718_v16 }
  0xec   :  { %2404 = vmatmul.mubr.msk.f32.vlgmr.msra.gmra.mrb[4].mxu1 %vm37_vm0, %v2835_v26 }
  0xed   :  { %454 = vrot.lane.b32.xlu0 %v2835_v26, %s2720_s5  ;;  %2408 = vmatprep.mubr.msk.f32.mxu1 %vm2719_vm1, %v2718_v16 }
  0xee   :  { %2407 = vmatpush3.msra.mxu1 %v2850_v30 }
  0xef   :  { %2416 = vmatprep.subr.mxu1 %v2718_v16 }
 0x15b   :  { %v457_v31 = vpop.permute.xlu0 %456 }
 0x15c   :  { %2412 = vmatpush3.xpose.msk.msra.mxu0 %vm37_vm0, %v457_v31 }
 0x15d   :  { %2593 = vmatprep.subr.bf16.mxu0 %v2723_v56 }
 0x15f   :  { %v455_v32 = vpop.permute.xlu0 %454 }
 0x160   :  { %2414 = vmatmul.mubr.msk.f32.vlgmr.msra.gmra.mrb[2].mxu0 %vm37_vm0, %v455_v32 }
 0x161   :  { %2429 = vmatprep.mubr.msk.f32.mxu0 %vm2719_vm1, %v2718_v16  ;;  %2595 = vmatpush3.bf16.msra.mxu0 %v2884_v57 }
 0x162   :  { %2596 = vmatprep.subr.bf16.mxu0 %v2723_v56 }
 0x165   :  { %2598 = vmatpush3.bf16.msra.mxu0 %v2890_v59 }
 0x166   :  { %2599 = vmatprep.subr.bf16.mxu0 %v2723_v56 }
 0x1bf   :  { %v361_v33 = vpop.f32.mrb[4].mxu1 }
 0x1c0   :  { %v2405_v34 = vpop.f32.mrb[5].mxu1  ;;  %v366_v35 = vsel %vm365_vm2, %v361_v33, -inf }
 0x1c1   :  { %367 = vmax.xlane.f32.xlu1 %v366_v35 }
 0x233   :  { %v528_v36 = vpop.f32.mrb[2].mxu0 }
 0x234   :  { %v2415_v37 = vpop.f32.mrb[3].mxu0  ;;  %v532_v38 = vsel %vm365_vm2, %v528_v36, -inf }
 0x235   :  { %533 = vmax.xlane.f32.xlu1 %v532_v38 }
 0x246   :  { %544 = vrot.lane.b32.xlu1 %v2850_v30, %s2720_s5 }
 0x24a   :  { %772 = vrot.lane.b32.xlu1 %v195_v28, %s2721_s2 }
 0x24e   :  { %v368_v39 = vpop.xlane.xlu1 %367 }
 0x24f   :  { %v369_v40 = vsub.f32 %v361_v33, %v368_v39 }
 0x251   :  { %v370_v41 = vmul.f32 1.442695, %v369_v40 }
 0x253   :  { %2662 = vpow2.f32 %v370_v41 }
 0x25d   :  { %v2663_v42 = vpop.eup %2662 }
 0x25e   :  { %v372_v43 = vsel %vm365_vm2, %v2663_v42, 0.0 }
 0x25f   :  { %373 = vadd.xlane.f32.xlu0 %v372_v43 }
 0x275   :  { %859 = vrot.lane.b32.xlu0 %v2850_v30, %s2721_s2 }
 0x279   :  { %1015 = vrot.lane.b32.xlu0 %v195_v28, %s2722_s10  ;;  %v938_v28 = vld [vmem:[%s3103_s6 + $0x58] sm:$0xff] }
 0x2c2   :  { %v534_v44 = vpop.xlane.xlu1 %533 }
 0x2c3   :  { %v535_v45 = vsub.f32 %v528_v36, %v534_v44 }
 0x2c5   :  { %v536_v46 = vmul.f32 1.442695, %v535_v45 }
 0x2c6   :  { %v545_v52 = vpop.permute.xlu1 %544 }
 0x2c7   :  { %2664 = vpow2.f32 %v536_v46  ;;  %v1178_v46 = vld [vmem:[%s3103_s6 + $0x60] sm:$0xff] }
 0x2ca   :  { %v773_v60 = vpop.permute.xlu1 %772 }
 0x2d1   :  { %v2665_v47 = vpop.eup %2664 }
 0x2d2   :  { %v538_v48 = vsel %vm365_vm2, %v2665_v47, 0.0 }
 0x2d3   :  { %539 = vadd.xlane.f32.xlu1 %v538_v48  ;;  %v1180_v48 = vld [vmem:[%s3103_s6 + $0x70] sm:$0xff] }
 0x2e4   :  { %770 = vrot.lane.b32.xlu1 %v2835_v26, %s2721_s2 }
 0x2ec   :  { %v374_v49 = vpop.xlane.xlu0 %373 }
 0x2ed   :  { %2666 = vrcp.f32 %v374_v49 }
 0x2f0   :  { %v860_v1 = vpop.permute.xlu0 %859 }
 0x2f4   :  { %v1016_v31 = vpop.permute.xlu0 %1015 }
 0x2f7   :  { %v2667_v50 = vpop.eup %2666 }
 0x2f8   :  { %v376_v51 = vmul.f32 %v2667_v50, %v2663_v42  ;;  %v1181_v50 = vld [vmem:[%s3103_s6 + $0x78] sm:$0xff] }
 0x2fa   :  { %2409 = vmatmul.mubr.msk.f32.vlgmr.msra.gmra.mrb[6].mxu1 %vm365_vm2, %v376_v51 }
 0x2fb   :  { %2417 = vmatpush3.msra.mxu1 %v545_v52  ;;  %2418 = vmatprep.mubr.msk.f32.mxu1 %vm2719_vm1, %v2718_v16 }
 0x2fc   :  { %2443 = vmatprep.subr.mxu1 %v2718_v16 }
 0x360   :  { %v540_v61 = vpop.xlane.xlu1 %539 }
 0x361   :  { %2668 = vrcp.f32 %v540_v61 }
 0x364   :  { %v771_v0 = vpop.permute.xlu1 %770 }
 0x36b   :  { %v2669_v62 = vpop.eup %2668 }
 0x36c   :  { %v542_v63 = vmul.f32 %v2669_v62, %v2665_v47  ;;  %v1179_v47 = vld [vmem:[%s3103_s6 + $0x68] sm:$0xff]  ;;  %s2724_s6 = smov [#allocation2]  }
 0x36d   :  { %v2980_v49 = vpack.c.bf16 %v1179_v47, %v1178_v46 }
 0x36e   :  { %2419 = vmatmul.mubr.msk.f32.vlgmr.msra.gmra.mrb[8].mxu1 %vm365_vm2, %v542_v63 }
 0x36f   :  { %2444 = vmatpush3.xpose.msk.msra.mxu1 %vm37_vm0, %v773_v60  ;;  %2445 = vmatprep.mubr.msk.f32.mxu1 %vm2719_vm1, %v2718_v16 }
 0x370   :  { %2448 = vmatprep.subr.mxu1 %v2718_v16 }
 0x372   :  { %2446 = vmatmul.mubr.msk.f32.vlgmr.msra.gmra.mrb[10].mxu1 %vm37_vm0, %v771_v0 }
 0x373   :  { %2449 = vmatpush3.msra.mxu1 %v860_v1  ;;  %2450 = vmatprep.mubr.msk.f32.mxu1 %vm2719_vm1, %v2718_v16 }
 0x374   :  { %2464 = vmatprep.subr.mxu1 %v2718_v16 }
 0x3cd   :  { %v446_v2 = vpop.f32.mrb[6].mxu1 }
 0x3ce   :  { %v2410_v3 = vpop.f32.mrb[7].mxu1 }
 0x441   :  { %v616_v9 = vpop.f32.mrb[8].mxu1 }
 0x442   :  { %v2420_v10 = vpop.f32.mrb[9].mxu1  ;;  %2430 = vmatmul.mubr.msk.f32.vlgmr.msra.gmra.mrb[4].mxu0 %vm37_vm0, %v616_v9 }
 0x443   :  { %2601 = vmatpush3.bf16.msra.mxu0 %v2910_v6  ;;  %2440 = vmatprep.mubr.msk.f32.mxu0 %vm2719_vm1, %v2718_v16 }
 0x444   :  { %2602 = vmatprep.subr.bf16.mxu0 %v2723_v56 }
 0x445   :  { %v844_v12 = vpop.f32.mrb[10].mxu1 }
 0x446   :  { %v2447_v13 = vpop.f32.mrb[11].mxu1  ;;  %v848_v14 = vsel %vm365_vm2, %v844_v12, -inf }
 0x447   :  { %2604 = vmatpush3.bf16.msra.mxu0 %v2920_v11  ;;  %849 = vmax.xlane.f32.xlu1 %v848_v14 }
 0x448   :  { %2605 = vmatprep.subr.bf16.mxu0 %v2723_v56 }
 0x44a   :  { %2441 = vmatmul.mubr.msk.f32.vlgmr.msra.gmra.mrb[4].mxu0 %vm37_vm0, %v446_v2 }
 0x44b   :  { %2461 = vmatprep.mubr.msk.f32.mxu0 %vm2719_vm1, %v2718_v16  ;;  %2607 = vmatpush3.bf16.msra.mxu0 %v2943_v24 }
 0x44c   :  { %2608 = vmatprep.subr.bf16.mxu0 %v2723_v56 }
 0x4d4   :  { %v850_v15 = vpop.xlane.xlu1 %849 }
 0x4d5   :  { %v851_v17 = vsub.f32 %v844_v12, %v850_v15 }
 0x4d7   :  { %v852_v18 = vmul.f32 1.442695, %v851_v17 }
 0x4d9   :  { %2670 = vpow2.f32 %v852_v18 }
 0x4e3   :  { %v2671_v19 = vpop.eup %2670 }
 0x4e4   :  { %v854_v20 = vsel %vm365_vm2, %v2671_v19, 0.0 }
 0x4e5   :  { %855 = vadd.xlane.f32.xlu0 %v854_v20 }
 0x4fb   :  { %1013 = vrot.lane.b32.xlu0 %v2835_v26, %s2722_s10  ;;  %v2949_v26 = vpack.c.bf16 %v938_v28, %v937_v23 }
 0x4fd   :  { %2610 = vmatpush3.bf16.msra.mxu0 %v2949_v26 }
 0x4fe   :  { %2611 = vmatprep.subr.bf16.mxu0 %v2723_v56 }
 0x572   :  { %v856_v32 = vpop.xlane.xlu0 %855 }
 0x573   :  { %2672 = vrcp.f32 %v856_v32 }
 0x576   :  { %v1014_v35 = vpop.permute.xlu0 %1013 }
 0x57d   :  { %v2673_v33 = vpop.eup %2672 }
 0x57e   :  { %v858_v34 = vmul.f32 %v2673_v33, %v2671_v19 }
 0x580   :  { %2451 = vmatmul.mubr.msk.f32.vlgmr.msra.gmra.mrb[12].mxu1 %vm365_vm2, %v858_v34 }
 0x581   :  { %2465 = vmatpush3.xpose.msk.msra.mxu1 %vm37_vm0, %v1016_v31  ;;  %2466 = vmatprep.mubr.msk.f32.mxu1 %vm2719_vm1, %v2718_v16 }
 0x582   :  { %2469 = vmatprep.subr.mxu1 %v2718_v16 }
 0x584   :  { %2467 = vmatmul.mubr.msk.f32.vlgmr.msra.gmra.mrb[14].mxu1 %vm37_vm0, %v1014_v35 }
 0x585   :  { %2471 = vmatprep.mubr.msk.f32.mxu1 %vm2719_vm1, %v2718_v16 }
 0x653   :  { %v931_v36 = vpop.f32.mrb[12].mxu1 }
 0x654   :  { %v2452_v37 = vpop.f32.mrb[13].mxu1  ;;  %2462 = vmatmul.mubr.msk.f32.vlgmr.msra.gmra.mrb[4].mxu0 %vm37_vm0, %v931_v36 }
 0x655   :  { %2482 = vmatprep.mubr.msk.f32.mxu0 %vm2719_vm1, %v2718_v16  ;;  %2613 = vmatpush3.bf16.msra.mxu0 %v2980_v49 }
 0x656   :  { %2614 = vmatprep.subr.bf16.mxu0 %v2723_v56 }
 0x657   :  { %v1087_v38 = vpop.f32.mrb[14].mxu1 }
 0x658   :  { %v2468_v39 = vpop.f32.mrb[15].mxu1  ;;  %v1091_v40 = vsel %vm365_vm2, %v1087_v38, -inf }
 0x659   :  { %1092 = vmax.xlane.f32.xlu0 %v1091_v40 }
 0x66f   :  { %1423 = vrot.lane.b32.xlu0 %v2837_v27, %s2720_s5 }
 0x6e6   :  { %v1093_v41 = vpop.xlane.xlu0 %1092 }
 0x6e7   :  { %v1094_v42 = vsub.f32 %v1087_v38, %v1093_v41 }
 0x6e9   :  { %v1095_v43 = vmul.f32 1.442695, %v1094_v42 }
 0x6ea   :  { %v1424_v5 = vpop.permute.xlu0 %1423 }
 0x6eb   :  { %2674 = vpow2.f32 %v1095_v43 }
 0x6f5   :  { %v2675_v44 = vpop.eup %2674 }
 0x6f6   :  { %v1097_v45 = vsel %vm365_vm2, %v2675_v44, 0.0 }
 0x6f7   :  { %1098 = vadd.xlane.f32.xlu1 %v1097_v45 }
 0x708   :  { %1102 = vrot.lane.b32.xlu1 %v2850_v30, %s2722_s10  ;;  %v2986_v30 = vpack.c.bf16 %v1181_v50, %v1180_v48 }
 0x70a   :  { %2616 = vmatpush3.bf16.msra.mxu0 %v2986_v30 }
 0x70b   :  { %2617 = vmatprep.subr.bf16.mxu0 %v2723_v56 }
 0x784   :  { %v1099_v51 = vpop.xlane.xlu1 %1098 }
 0x785   :  { %2676 = vrcp.f32 %v1099_v51 }
 0x788   :  { %v1103_v52 = vpop.permute.xlu1 %1102 }
 0x789   :  { %2470 = vmatpush3.msra.mxu1 %v1103_v52 }
 0x78a   :  { %2485 = vmatprep.subr.mxu1 %v2718_v16 }
 0x78f   :  { %v2677_v53 = vpop.eup %2676 }
 0x790   :  { %v1101_v54 = vmul.f32 %v2677_v53, %v2675_v44 }
 0x792   :  { %2472 = vmatmul.mubr.msk.f32.vlgmr.msra.gmra.mrb[16].mxu1 %vm365_vm2, %v1101_v54 }
 0x793   :  { %2486 = vmatpush3.xpose.msk.msra.mxu1 %vm37_vm0, %v2837_v27  ;;  %2487 = vmatprep.mubr.msk.f32.mxu1 %vm2719_vm1, %v2718_v16 }
 0x794   :  { %2490 = vmatprep.subr.mxu1 %v2718_v16 }
 0x796   :  { %2488 = vmatmul.mubr.msk.f32.vlgmr.msra.gmra.mrb[18].mxu1 %vm37_vm0, %v2833_v25 }
 0x797   :  { %2491 = vmatpush3.msra.mxu1 %v2848_v29  ;;  %2492 = vmatprep.mubr.msk.f32.mxu1 %vm2719_vm1, %v2718_v16 }
 0x798   :  { %2495 = vmatprep.subr.mxu1 %v2718_v16 }
 0x865   :  { %v1174_v55 = vpop.f32.mrb[16].mxu1 }
 0x866   :  { %v2473_v58 = vpop.f32.mrb[17].mxu1  ;;  %2483 = vmatmul.mubr.msk.f32.vlgmr.msra.gmra.mrb[4].mxu0 %vm37_vm0, %v1174_v55 }
 0x867   :  { %2619 = vmatpush3.bf16.msra.mxu0 %v2884_v57  ;;  %2513 = vmatprep.mubr.msk.f32.mxu0 %vm2719_vm1, %v2718_v16 }
 0x868   :  { %2620 = vmatprep.subr.bf16.mxu0 %v2723_v56 }
 0x869   :  { %v1329_v60 = vpop.f32.mrb[18].mxu1 }
 0x86a   :  { %v2489_v61 = vpop.f32.mrb[19].mxu1  ;;  %v1333_v62 = vsel %vm365_vm2, %v1329_v60, -inf }
 0x86b   :  { %1334 = vmax.xlane.f32.xlu1 %v1333_v62  ;;  %2622 = vmatpush3.bf16.msra.mxu0 %v2890_v59 }
 0x86c   :  { %2623 = vmatprep.subr.bf16.mxu0 %v2723_v56 }
 0x8f8   :  { %v1335_v63 = vpop.xlane.xlu1 %1334 }
 0x8f9   :  { %v1336_v0 = vsub.f32 %v1329_v60, %v1335_v63 }
 0x8fb   :  { %v1337_v1 = vmul.f32 1.442695, %v1336_v0 }
 0x8fd   :  { %2678 = vpow2.f32 %v1337_v1 }
 0x907   :  { %v2679_v2 = vpop.eup %2678 }
 0x908   :  { %v1339_v57 = vsel %vm365_vm2, %v2679_v2, 0.0 }
 0x909   :  { %1340 = vadd.xlane.f32.xlu0 %v1339_v57 }
 0x91f   :  { %1421 = vrot.lane.b32.xlu0 %v2833_v25, %s2720_s5 }
 0x939   :  { %v1251_v3 = vpop.f32.mrb[4].mxu0 }
 0x93a   :  { %1256 = vst.msk [vmem:[#allocation2] sm:$0xff] %vm37_vm0, %v1251_v3  ;;  %v2484_v4 = vpop.f32.mrb[5].mxu0 }
 0x996   :  { %v1341_v7 = vpop.xlane.xlu0 %1340 }
 0x997   :  { %2680 = vrcp.f32 %v1341_v7 }
 0x99a   :  { %v1422_v9 = vpop.permute.xlu0 %1421 }
 0x9a1   :  { %v2681_v59 = vpop.eup %2680 }
 0x9a2   :  { %v1343_v8 = vmul.f32 %v2681_v59, %v2679_v2 }
 0x9a4   :  { %2493 = vmatmul.mubr.msk.f32.vlgmr.msra.gmra.mrb[20].mxu1 %vm365_vm2, %v1343_v8 }
 0x9a5   :  { %2496 = vmatpush3.xpose.msk.msra.mxu1 %vm37_vm0, %v1424_v5  ;;  %2497 = vmatprep.mubr.msk.f32.mxu1 %vm2719_vm1, %v2718_v16 }
 0x9a6   :  { %2500 = vmatprep.subr.mxu1 %v2718_v16 }
 0x9a8   :  { %2498 = vmatmul.mubr.msk.f32.vlgmr.msra.gmra.mrb[22].mxu1 %vm37_vm0, %v1422_v9 }
 0x9a9   :  { %2502 = vmatprep.mubr.msk.f32.mxu1 %vm2719_vm1, %v2718_v16 }
 0xa77   :  { %v1413_v10 = vpop.f32.mrb[20].mxu1 }
 0xa78   :  { %v2494_v12 = vpop.f32.mrb[21].mxu1 }
 0xa7b   :  { %v1495_v13 = vpop.f32.mrb[22].mxu1 }
 0xa7c   :  { %v2499_v14 = vpop.f32.mrb[23].mxu1  ;;  %v1499_v15 = vsel %vm365_vm2, %v1495_v13, -inf }
 0xa7d   :  { %1500 = vmax.xlane.f32.xlu1 %v1499_v15 }
 0xa8e   :  { %1511 = vrot.lane.b32.xlu1 %v2848_v29, %s2720_s5  ;;  %s2229_s5 = sshll.u32 %s2724_s6, 4  ;;  %s2230_s5 = int_to_ptr.vmem [resolvable:$true] %s2229_s5 }
 0xa8f   :  { %p2699_p1 = scmp.lt.s32.totalorder %s2230_s5, %s2230_s5 }
 0xa92   :  { %1739 = vrot.lane.b32.xlu1 %v2837_v27, %s2721_s2 }
 0xa96   :  { %1737 = vrot.lane.b32.xlu1 %v2833_v25, %s2721_s2 }
 0xb0a   :  { %v1501_v17 = vpop.xlane.xlu1 %1500 }
 0xb0b   :  { %v1502_v18 = vsub.f32 %v1495_v13, %v1501_v17 }
 0xb0d   :  { %v1503_v19 = vmul.f32 1.442695, %v1502_v18 }
 0xb0e   :  { %v1512_v20 = vpop.permute.xlu1 %1511 }
 0xb0f   :  { %2682 = vpow2.f32 %v1503_v19  ;;  %2501 = vmatpush3.msra.mxu1 %v1512_v20 }
 0xb10   :  { %2527 = vmatprep.subr.mxu1 %v2718_v16 }
 0xb12   :  { %v1740_v31 = vpop.permute.xlu1 %1739 }
 0xb16   :  { %v1738_v33 = vpop.permute.xlu1 %1737 }
 0xb19   :  { %v2683_v21 = vpop.eup %2682 }
 0xb1a   :  { %v1505_v22 = vsel %vm365_vm2, %v2683_v21, 0.0 }
 0xb1b   :  { %1506 = vadd.xlane.f32.xlu0 %v1505_v22 }
 0xb31   :  { %1826 = vrot.lane.b32.xlu0 %v2848_v29, %s2721_s2  ;;  %s2694_s2 = scalar_lea.vmem %s2230_s5, 256 }
 0xb32   :  { %p2695_p0 = scmp.ne.s32.totalorder %s2230_s5, %s2694_s2  ;;  %p2700_p2 = scmp.lt.s32.totalorder %s2694_s2, %s2694_s2 }
 0xb34   :  { %p2701_p3 = por %p2700_p2, %p2699_p1 }
 0xb35   :  { %1982 = vrot.lane.b32.xlu0 %v2837_v27, %s2722_s10 }
 0xb36   :  { %p2702_p4 = pnand %p2701_p3, %p2695_p0 }
 0xba8   :  { %v1507_v23 = vpop.xlane.xlu0 %1506 }
 0xba9   :  { %2684 = vrcp.f32 %v1507_v23 }
 0xbac   :  { %v1827_v34 = vpop.permute.xlu0 %1826 }
 0xbb3   :  { %v2685_v28 = vpop.eup %2684 }
 0xbb4   :  { %v1509_v32 = vmul.f32 %v2685_v28, %v2683_v21 }
 0xbb6   :  { %2503 = vmatmul.mubr.msk.f32.vlgmr.msra.gmra.mrb[24].mxu1 %vm365_vm2, %v1509_v32 }
 0xbb7   :  { %2528 = vmatpush3.xpose.msk.msra.mxu1 %vm37_vm0, %v1740_v31  ;;  %2529 = vmatprep.mubr.msk.f32.mxu1 %vm2719_vm1, %v2718_v16 }
 0xbb8   :  { %2532 = vmatprep.subr.mxu1 %v2718_v16 }
 0xbba   :  { %2530 = vmatmul.mubr.msk.f32.vlgmr.msra.gmra.mrb[26].mxu1 %vm37_vm0, %v1738_v33 }
 0xbbb   :  { %2533 = vmatpush3.msra.mxu1 %v1827_v34  ;;  %2534 = vmatprep.mubr.msk.f32.mxu1 %vm2719_vm1, %v2718_v16 }
 0xbbc   :  { %2548 = vmatprep.subr.mxu1 %v2718_v16 }
 0xc89   :  { %v1583_v27 = vpop.f32.mrb[24].mxu1 }
 0xc8a   :  { %v2504_v35 = vpop.f32.mrb[25].mxu1  ;;  %2514 = vmatmul.mubr.msk.f32.vlgmr.msra.gmra.mrb[6].mxu0 %vm37_vm0, %v1583_v27 }
 0xc8b   :  { %2625 = vmatpush3.bf16.msra.mxu0 %v2910_v6  ;;  %2524 = vmatprep.mubr.msk.f32.mxu0 %vm2719_vm1, %v2718_v16 }
 0xc8c   :  { %2626 = vmatprep.subr.bf16.mxu0 %v2723_v56 }
 0xc8d   :  { %v1811_v36 = vpop.f32.mrb[26].mxu1 }
 0xc8e   :  { %v2531_v37 = vpop.f32.mrb[27].mxu1  ;;  %v1815_v38 = vsel %vm365_vm2, %v1811_v36, -inf }
 0xc8f   :  { %2628 = vmatpush3.bf16.msra.mxu0 %v2920_v11  ;;  %1816 = vmax.xlane.f32.xlu1 %v1815_v38 }
 0xc90   :  { %2629 = vmatprep.subr.bf16.mxu0 %v2723_v56 }
 0xc92   :  { %2525 = vmatmul.mubr.msk.f32.vlgmr.msra.gmra.mrb[6].mxu0 %vm37_vm0, %v1413_v10 }
 0xc93   :  { %2631 = vmatpush3.bf16.msra.mxu0 %v2943_v24  ;;  %2545 = vmatprep.mubr.msk.f32.mxu0 %vm2719_vm1, %v2718_v16  ;;  %v1983_v24 = vpop.permute.xlu0 %1982 }
 0xc94   :  { %2632 = vmatprep.subr.bf16.mxu0 %v2723_v56 }
 0xc97   :  { %2634 = vmatpush3.bf16.msra.mxu0 %v2949_v26 }
 0xc98   :  { %2635 = vmatprep.subr.bf16.mxu0 %v2723_v56 }
 0xd1c   :  { %v1817_v6 = vpop.xlane.xlu1 %1816 }
 0xd1d   :  { %v1818_v39 = vsub.f32 %v1811_v36, %v1817_v6 }
 0xd1f   :  { %v1819_v40 = vmul.f32 1.442695, %v1818_v39 }
 0xd21   :  { %2686 = vpow2.f32 %v1819_v40 }
 0xd2b   :  { %v2687_v11 = vpop.eup %2686 }
 0xd2c   :  { %v1821_v41 = vsel %vm365_vm2, %v2687_v11, 0.0 }
 0xd2d   :  { %1822 = vadd.xlane.f32.xlu0 %v1821_v41 }
 0xd43   :  { %1980 = vrot.lane.b32.xlu0 %v2833_v25, %s2722_s10 }
 0xdba   :  { %v1823_v42 = vpop.xlane.xlu0 %1822 }
 0xdbb   :  { %2688 = vrcp.f32 %v1823_v42 }
 0xdbe   :  { %v1981_v26 = vpop.permute.xlu0 %1980 }
 0xdc5   :  { %v2689_v43 = vpop.eup %2688 }
 0xdc6   :  { %v1825_v44 = vmul.f32 %v2689_v43, %v2687_v11 }
 0xdc8   :  { %2535 = vmatmul.mubr.msk.f32.vlgmr.msra.gmra.mrb[28].mxu1 %vm365_vm2, %v1825_v44 }
 0xdc9   :  { %2549 = vmatpush3.xpose.msk.msra.mxu1 %vm37_vm0, %v1983_v24  ;;  %2550 = vmatprep.mubr.msk.f32.mxu1 %vm2719_vm1, %v2718_v16 }
 0xdca   :  { %2553 = vmatprep.subr.mxu1 %v2718_v16 }
 0xdcc   :  { %2551 = vmatmul.mubr.msk.f32.vlgmr.msra.gmra.mrb[30].mxu1 %vm37_vm0, %v1981_v26 }
 0xdcd   :  { %2555 = vmatprep.mubr.msk.f32.mxu1 %vm2719_vm1, %v2718_v16 }
 0xe9b   :  { %v1898_v25 = vpop.f32.mrb[28].mxu1 }
 0xe9c   :  { %v2536_v45 = vpop.f32.mrb[29].mxu1  ;;  %2546 = vmatmul.mubr.msk.f32.vlgmr.msra.gmra.mrb[6].mxu0 %vm37_vm0, %v1898_v25 }
 0xe9d   :  { %2637 = vmatpush3.bf16.msra.mxu0 %v2980_v49  ;;  %2566 = vmatprep.mubr.msk.f32.mxu0 %vm2719_vm1, %v2718_v16 }
 0xe9e   :  { %2638 = vmatprep.subr.bf16.mxu0 %v2723_v56 }
 0xe9f   :  { %v2054_v46 = vpop.f32.mrb[30].mxu1 }
 0xea0   :  { %v2552_v47 = vpop.f32.mrb[31].mxu1  ;;  %v2058_v48 = vsel %vm365_vm2, %v2054_v46, -inf }
 0xea1   :  { %2059 = vmax.xlane.f32.xlu1 %v2058_v48  ;;  %2640 = vmatpush3.bf16.msra.mxu0 %v2986_v30 }
 0xeb2   :  { %2069 = vrot.lane.b32.xlu1 %v2848_v29, %s2722_s10 }
 0xf2e   :  { %v2060_v50 = vpop.xlane.xlu1 %2059 }
 0xf2f   :  { %v2061_v51 = vsub.f32 %v2054_v46, %v2060_v50 }
 0xf31   :  { %v2062_v52 = vmul.f32 1.442695, %v2061_v51 }
 0xf32   :  { %v2070_v53 = vpop.permute.xlu1 %2069 }
 0xf33   :  { %2690 = vpow2.f32 %v2062_v52  ;;  %2554 = vmatpush3.msra.mxu1 %v2070_v53 }
 0xf3d   :  { %v2691_v49 = vpop.eup %2690 }
 0xf3e   :  { %v2064_v16 = vsel %vm365_vm2, %v2691_v49, 0.0 }
 0xf3f   :  { %2065 = vadd.xlane.f32.xlu0 %v2064_v16 }
 0xfcc   :  { %v2066_v56 = vpop.xlane.xlu0 %2065 }
 0xfcd   :  { %2692 = vrcp.f32 %v2066_v56 }
 0xfd7   :  { %v2693_v54 = vpop.eup %2692 }
 0xfd8   :  { %v2068_v55 = vmul.f32 %v2693_v54, %v2691_v49 }
 0xfda   :  { %2556 = vmatmul.mubr.msk.f32.vlgmr.msra.gmra.mrb[32].mxu1 %vm365_vm2, %v2068_v55 }
0x10ad   :  { %v2141_v30 = vpop.f32.mrb[32].mxu1 }
0x10ae   :  { %v2557_v58 = vpop.f32.mrb[33].mxu1  ;;  %2567 = vmatmul.mubr.msk.f32.vlgmr.msra.gmra.mrb[6].mxu0 %vm37_vm0, %v2141_v30 }
0x1181   :  { %v2218_v29 = vpop.f32.mrb[6].mxu0 }
0x1182   :  { %2223 = vst.msk [vmem:[#allocation2 + $0x8] sm:$0xff] %vm37_vm0, %v2218_v29  ;;  %v2568_v60 = vpop.f32.mrb[7].mxu0 }
0x1183   :  { %2705 = shalt.err (!%p2702_p4)
}
0x1184   :  { %s2706_s17 = scalar_lea.hbm %s3104_s7, 256 }
0x1185   :  { %p2707_p5 = scmp.ne.s32.totalorder %s3104_s7, %s2706_s17  ;;  %p2710_p6 = scmp.lt.u32.totalorder %s2706_s17, %s3104_s7 }
0x1187   :  { %p2712_p7 = pnand %p2710_p6, %p2707_p5 }
0x1189   :  { %2715 = shalt.err (!%p2712_p7)
}
0x118a   :  { %s2725_s22 = smov 128   ;;  %s2726_s4 = smov 8  }
0x118b   :  { %2235 = dma.vmem_to_hbm [thread:$0]  %s2230_s5, 256, %s3104_s7, [#allocation3], %s2725_s22, %s2725_s22, %s2726_s4  }
0x118c   :  { %2716 = dma.done.wait [#allocation3], 256  }
0x118d   :  { %2717 = vsyncadd [#allocation3], 4294967040 }
0x118e   :  { %2239 = vsyncpa [#allocation3], 1 }

</bundles_post_ra>
